<compile_context>
chip_gen: v7x
topology: tpu7x:2x2x1
jax: 0.10.0
libtpu: 0.0.40
codegen_flags: <defaults>
</compile_context>

<pallas_src>
import functools
import math

import jax
import jax.numpy as jnp
import numpy as np
from jax.experimental import pallas as pl
from jax.experimental.pallas import tpu as pltpu

_TARGET_BLOCK_BYTES = 3 * 1024 * 1024      # per-operand f32 block (~3 MiB)
_MAX_LANE_WIDTH = 4096
_VMEM_LIMIT_BYTES = 48 * 1024 * 1024


def _focal_loss_math(x, t, wm1, gamma):
    """x, t: f32 tiles.  wm1 = balance_weight - 1 (python float or (1, L) f32 row).
    gamma: static python float."""
    nx = -x
    # log(sigmoid(x)) = -(max(-x, 0) + log1p(exp(-|x|)));  -|x| == min(x, -x)
    log_sig_pos = -(jnp.maximum(nx, 0.0) + jnp.log1p(jnp.exp(jnp.minimum(x, nx))))

    # bce = -(t*lsp)*w - (1-t)*lsn  with  lsn = lsp - x
    #     = (1-t)*x - ((w-1)*t + 1)*lsp
    if isinstance(wm1, float) and wm1 == 0.0:
        bce = (1.0 - t) * x - log_sig_pos
    else:
        bce = (1.0 - t) * x - (wm1 * t + 1.0) * log_sig_pos

    if gamma == 0.0:
        cls_loss = bce                        # focal weight == 1, statically
    else:
        log_sig_neg = log_sig_pos - x         # log(sigmoid(-x))
        # focal base = where(t==1, 1-p, p) = exp(where(t==1, lsn, lsp))
        chosen_log = jnp.where(t == 1.0, log_sig_neg, log_sig_pos)
        g_int = int(gamma)
        if float(g_int) == float(gamma) and 1 <= g_int <= 8:
            base = jnp.exp(chosen_log)        # single EUP exp
            focal = base
            for _ in range(g_int - 1):        # integer power via multiplies
                focal = focal * base
        else:
            focal = jnp.exp(gamma * chosen_log)
        cls_loss = focal * bce

    # fuse the two masks: zero ignored targets (t == -1) and tiny losses
    keep = (t != -1.0) & (cls_loss >= 1e-5)
    return jnp.where(keep, cls_loss, 0.0)


def _kernel_scalar_w(x_ref, t_ref, o_ref, *, gamma, wm1):
    x = x_ref[...].astype(jnp.float32)
    t = t_ref[...].astype(jnp.float32)
    o_ref[...] = _focal_loss_math(x, t, wm1, gamma).astype(o_ref.dtype)


def _kernel_vector_w(x_ref, t_ref, w_ref, o_ref, *, gamma):
    x = x_ref[...].astype(jnp.float32)
    t = t_ref[...].astype(jnp.float32)
    wm1 = w_ref[...].astype(jnp.float32)      # (1, L) row, broadcasts over rows
    o_ref[...] = _focal_loss_math(x, t, wm1, gamma).astype(o_ref.dtype)


def _pick_lane_width(total, base):
    """Largest multiple of `base` (<= _MAX_LANE_WIDTH) that divides `total`."""
    if total < base:
        return None
    k_max = min(_MAX_LANE_WIDTH // base, total // base)
    for k in range(k_max, 0, -1):
        lw = base * k
        if total % lw == 0:
            return lw
    return None


def sigmoid_focal_loss(cls_pred, targets, gamma=0.0, balance_weights=None,
                       out_dtype=jnp.float32):
    """cls_pred, targets: [..., num_classes]; returns loss of same shape."""
    if balance_weights is None:
        balance_weights = jnp.array([1.0], dtype=jnp.float32)

    try:
        gamma = float(gamma)
    except Exception as e:  # traced gamma is not supported (static config only)
        raise ValueError("gamma must be a static Python number") from e

    orig_shape = cls_pred.shape
    C = orig_shape[-1] if len(orig_shape) else 1
    total = cls_pred.size
    if total == 0:
        return jnp.zeros(orig_shape, out_dtype)

    bw = jnp.asarray(balance_weights, dtype=jnp.float32).reshape(-1)
    if bw.size not in (1, C):
        raise ValueError("balance_weights must have 1 or num_classes elements")
    try:
        bw_host = np.asarray(jax.device_get(bw), dtype=np.float32)
    except Exception:                          # traced under jit -> kernel input
        bw_host = None

    # lane-dense width: multiple of 128 (vreg lanes); multiple of C only when
    # per-class weights make class alignment matter.
    base = 128 if bw.size == 1 else (C * 128) // math.gcd(C, 128)

    lane_width = _pick_lane_width(total, base)
    pad = 0
    if lane_width is None:                     # ragged total: small pad fallback
        lane_width = base * max(1, 512 // base)
        pad = (-total) % lane_width

    x_flat = cls_pred.reshape(-1)              # contiguous reshape: no copy
    t_flat = targets.reshape(-1)
    if pad:
        x_flat = jnp.pad(x_flat, (0, pad))     # fused into the call (see below)
        t_flat = jnp.pad(t_flat, (0, pad))
    rows = (total + pad) // lane_width
    x2 = x_flat.reshape(rows, lane_width)
    t2 = t_flat.reshape(rows, lane_width)

    # Block rows: ~3 MiB/operand f32, and keep >=2 grid steps for medium/large
    # inputs so the "parallel" axis feeds both v7x TensorCores.
    rows_cap = max(8, (_TARGET_BLOCK_BYTES // (lane_width * 4)) // 8 * 8)
    if rows <= 16:
        tr = rows                              # full-dim block is legal
    else:
        half = (((rows + 1) // 2) + 7) // 8 * 8   # ceil(rows/2) -> multiple of 8
        tr = max(8, min(rows_cap, half))
    grid = (pl.cdiv(rows, tr),)                # ragged last block is OK

    data_spec = pl.BlockSpec((tr, lane_width), lambda i: (i, 0))
    out_spec = pl.BlockSpec((tr, lane_width), lambda i: (i, 0))

    if bw_host is not None and bw_host.size == 1:
        # scalar weight folded in as a static constant (no extra operand / DMA)
        kernel = functools.partial(_kernel_scalar_w, gamma=gamma,
                                   wm1=float(bw_host[0]) - 1.0)
        in_specs = [data_spec, data_spec]
        operands = (x2, t2)
    else:
        # per-class (or traced) weights: one tiny (1, lane_width) (w - 1) row
        if bw.size == 1:
            wm1_row = jnp.broadcast_to(bw - 1.0, (1, lane_width))
        else:
            wm1_row = jnp.tile(bw - 1.0, lane_width // C).reshape(1, lane_width)
        kernel = functools.partial(_kernel_vector_w, gamma=gamma)
        in_specs = [data_spec, data_spec,
                    pl.BlockSpec((1, lane_width), lambda i: (0, 0))]
        operands = (x2, t2, wm1_row)

    bytes_accessed = total * (cls_pred.dtype.itemsize + targets.dtype.itemsize
                              + np.dtype(out_dtype).itemsize)
    cost = pl.CostEstimate(flops=25 * total, transcendentals=3 * total,
                           bytes_accessed=int(bytes_accessed))

    compiler_params = pltpu.CompilerParams(
        dimension_semantics=("parallel",),
        vmem_limit_bytes=_VMEM_LIMIT_BYTES,
        # only in the rare ragged case: let the pad fuse into the input
        # pipeline instead of materializing a padded copy in HBM
        allow_input_fusion=[True] * len(operands) if pad else None,
    )

    out = pl.pallas_call(
        kernel,
        out_shape=jax.ShapeDtypeStruct((rows, lane_width), out_dtype),
        grid_spec=pltpu.PrefetchScalarGridSpec(
            num_scalar_prefetch=0,
            grid=grid,
            in_specs=in_specs,
            out_specs=out_spec,
        ),
        compiler_params=compiler_params,
        cost_estimate=cost,
    )(*operands)

    out_flat = out.reshape(-1)
    if pad:
        out_flat = out_flat[:total]
    return out_flat.reshape(orig_shape)


def _reference(cls_pred, targets, gamma, balance_weights):
    probs = jax.nn.sigmoid(cls_pred)
    focal_weight = jnp.where(targets == 1.0, 1.0 - probs, probs) ** gamma
    bce = -(targets * jax.nn.log_sigmoid(cls_pred)) * balance_weights \
          + -((1.0 - targets) * jax.nn.log_sigmoid(-cls_pred))
    cls_loss = focal_weight * bce
    cls_loss = jnp.where(targets != -1.0, cls_loss, 0.0)
    cls_loss = jnp.where(cls_loss < 1e-5, 0.0, cls_loss)
    return cls_loss


if __name__ == "__main__":
    key = jax.random.PRNGKey(0)
    k1, k2, k3, k4 = jax.random.split(key, 4)

    B, A, C = 2, 256, 4                 # [batch, num_anchors, num_classes]
    cls_pred = jax.random.normal(k1, (B, A, C), dtype=jnp.float32) * 3.0
    targets = jax.random.randint(k2, (B, A, C), minval=-1, maxval=2)
    targets = targets.astype(jnp.float32)    # {-1 ignored, 0, 1}

    gamma = 2.0
    bw_scalar = jnp.array([20.0], dtype=jnp.float32)   # positives 20x background

    out = sigmoid_focal_loss(cls_pred, targets, gamma=gamma,
                             balance_weights=bw_scalar)
    out = jax.block_until_ready(out)
    ref = _reference(cls_pred, targets, gamma, bw_scalar)
    assert out.shape == (B, A, C)
    assert jnp.allclose(out, ref, atol=1e-5, rtol=1e-4), "scalar-weight mismatch"

    # per-class balance weights exercise the vector-weight kernel variant
    bw_vec = jnp.array([20.0, 1.0, 5.0, 2.0], dtype=jnp.float32)
    out_v = jax.block_until_ready(
        sigmoid_focal_loss(cls_pred, targets, gamma=0.0, balance_weights=bw_vec))
    ref_v = _reference(cls_pred, targets, 0.0, bw_vec)
    assert jnp.allclose(out_v, ref_v, atol=1e-5, rtol=1e-4), "vector-weight mismatch"

    # ragged element count (not a multiple of 128) exercises the pad fallback
    B2, A2 = 3, 37                      # total = 3*37*4 = 444
    cp2 = jax.random.normal(k3, (B2, A2, C), dtype=jnp.float32) * 3.0
    tg2 = jax.random.randint(k4, (B2, A2, C), minval=-1, maxval=2).astype(jnp.float32)
    out_r = jax.block_until_ready(
        sigmoid_focal_loss(cp2, tg2, gamma=2.0, balance_weights=bw_scalar))
    ref_r = _reference(cp2, tg2, 2.0, bw_scalar)
    assert out_r.shape == (B2, A2, C)
    assert jnp.allclose(out_r, ref_r, atol=1e-5, rtol=1e-4), "ragged-shape mismatch"

    print("KERNEL_OK")
</pallas_src>

<mosaic_0001>
module attributes {stable_mosaic.version = 11 : i64} {
  func.func @_kernel_scalar_w(%arg0: i32, %arg1: memref<1x2048xf32, #tpu.memory_space<vmem>>, %arg2: memref<1x2048xf32, #tpu.memory_space<vmem>>, %arg3: memref<1x2048xf32, #tpu.memory_space<vmem>>) attributes {dimension_semantics = [#tpu.dimension_semantics<parallel>], iteration_bounds = array<i64: 1>, scalar_prefetch = 0 : i64, scratch_operands = 0 : i64, tpu.core_type = #tpu.core_type<tc>, window_params = [{transform_indices = @transform_0, window_bounds = array<i64: 1, 2048>}, {transform_indices = @transform_1, window_bounds = array<i64: 1, 2048>}, {transform_indices = @transform_2, window_bounds = array<i64: 1, 2048>}]} {
    %c0 = arith.constant 0 : index
    %c0_0 = arith.constant 0 : index
    %0 = vector.load %arg1[%c0, %c0_0] : memref<1x2048xf32, #tpu.memory_space<vmem>>, vector<1x2048xf32>
    %c0_1 = arith.constant 0 : index
    %c0_2 = arith.constant 0 : index
    %1 = vector.load %arg2[%c0_1, %c0_2] : memref<1x2048xf32, #tpu.memory_space<vmem>>, vector<1x2048xf32>
    %cst = arith.constant 0.000000e+00 : f32
    %2 = vector.broadcast %cst : f32 to vector<1x2048xf32>
    %3 = arith.subf %2, %0 : vector<1x2048xf32>
    %cst_3 = arith.constant 0.000000e+00 : f32
    %4 = vector.broadcast %cst_3 : f32 to vector<1x2048xf32>
    %5 = arith.maximumf %3, %4 : vector<1x2048xf32>
    %6 = arith.minimumf %0, %3 : vector<1x2048xf32>
    %7 = math.exp %6 : vector<1x2048xf32>
    %8 = math.log1p %7 : vector<1x2048xf32>
    %9 = arith.addf %5, %8 : vector<1x2048xf32>
    %cst_4 = arith.constant 0.000000e+00 : f32
    %10 = vector.broadcast %cst_4 : f32 to vector<1x2048xf32>
    %11 = arith.subf %10, %9 : vector<1x2048xf32>
    %cst_5 = arith.constant 1.000000e+00 : f32
    %12 = vector.broadcast %cst_5 : f32 to vector<1x2048xf32>
    %13 = arith.subf %12, %1 : vector<1x2048xf32>
    %14 = arith.mulf %13, %0 : vector<1x2048xf32>
    %cst_6 = arith.constant 1.900000e+01 : f32
    %15 = vector.broadcast %cst_6 : f32 to vector<1x2048xf32>
    %16 = arith.mulf %15, %1 : vector<1x2048xf32>
    %cst_7 = arith.constant 1.000000e+00 : f32
    %17 = vector.broadcast %cst_7 : f32 to vector<1x2048xf32>
    %18 = arith.addf %16, %17 : vector<1x2048xf32>
    %19 = arith.mulf %18, %11 : vector<1x2048xf32>
    %20 = arith.subf %14, %19 : vector<1x2048xf32>
    %21 = arith.subf %11, %0 : vector<1x2048xf32>
    %cst_8 = arith.constant 1.000000e+00 : f32
    %22 = vector.broadcast %cst_8 : f32 to vector<1x2048xf32>
    %23 = arith.cmpf oeq, %1, %22 : vector<1x2048xf32>
    %24 = arith.select %23, %21, %11 : vector<1x2048xi1>, vector<1x2048xf32>
    %25 = math.exp %24 : vector<1x2048xf32>
    %26 = arith.mulf %25, %25 : vector<1x2048xf32>
    %27 = arith.mulf %26, %20 : vector<1x2048xf32>
    %cst_9 = arith.constant -1.000000e+00 : f32
    %28 = vector.broadcast %cst_9 : f32 to vector<1x2048xf32>
    %29 = arith.cmpf one, %1, %28 : vector<1x2048xf32>
    %cst_10 = arith.constant 9.99999974E-6 : f32
    %30 = vector.broadcast %cst_10 : f32 to vector<1x2048xf32>
    %31 = arith.cmpf oge, %27, %30 : vector<1x2048xf32>
    %32 = arith.andi %29, %31 : vector<1x2048xi1>
    %cst_11 = arith.constant 0.000000e+00 : f32
    %33 = vector.broadcast %cst_11 : f32 to vector<1x2048xf32>
    %34 = arith.select %32, %27, %33 : vector<1x2048xi1>, vector<1x2048xf32>
    %c0_12 = arith.constant 0 : index
    %c0_13 = arith.constant 0 : index
    %35 = vector.load %arg3[%c0_12, %c0_13] : memref<1x2048xf32, #tpu.memory_space<vmem>>, vector<1x2048xf32>
    tpu.vector_store %arg3[%c0_12, %c0_13], %34 {strides = array<i32>} : memref<1x2048xf32, #tpu.memory_space<vmem>>, vector<1x2048xf32>,
    return
  }
  func.func @transform_0(%arg0: i32) -> (i32, i32) {
    %c0_i32 = arith.constant 0 : i32
    %c0_i32_0 = arith.constant 0 : i32
    return %arg0, %c0_i32 : i32, i32
  }
  func.func @transform_1(%arg0: i32) -> (i32, i32) {
    %c0_i32 = arith.constant 0 : i32
    %c0_i32_0 = arith.constant 0 : i32
    return %arg0, %c0_i32 : i32, i32
  }
  func.func @transform_2(%arg0: i32) -> (i32, i32) {
    %c0_i32 = arith.constant 0 : i32
    %c0_i32_0 = arith.constant 0 : i32
    return %arg0, %c0_i32 : i32, i32
  }
}

</mosaic_0001>

<bundles_post_ra>
// kernel: tpu_custom_call.1
= control target key start
LH: loop header
LB: loop body
LE: loop exit
PB: predicated region body
PF: predicated region fallthrough
CT: control target
= control target key end

     0   :  { %7 = vsyncpa [#allocation3], 0  ;;  %s265_s0 = inlined_call_operand.hbm [shape: f32[1,2048], index: 0, kind: input, shape index: {}]   ;;  %s266_s1 = inlined_call_operand.hbm [shape: f32[1,2048], index: 1, kind: input, shape index: {}]   ;;  %s267_s2 = inlined_call_operand.hbm [shape: f32[1,2048], index: 2, kind: output, shape index: {}]  }
   0x1   :  { %8 = vsyncpa [#allocation6], 0 }
   0x2   :  { %9 = vsyncpa [#allocation4], 0  ;;  %s211_s9 = smov [#allocation2]   ;;  %s212_s11 = smov [#allocation5]  }
   0x3   :  { %s16_s10 = sshll.u32 %s211_s9, 4  ;;  %s26_s12 = sshll.u32 %s212_s11, 4  ;;  %s17_s10 = int_to_ptr.vmem [resolvable:$true] %s16_s10  ;;  %s27_s12 = int_to_ptr.vmem [resolvable:$true] %s26_s12 }
   0x4   :  { %s139_s15 = scalar_lea.hbm %s265_s0, 256 }
   0x5   :  { %p140_p0 = scmp.ne.s32.totalorder %s265_s0, %s139_s15  ;;  %p143_p1 = scmp.lt.u32.totalorder %s139_s15, %s265_s0 }
   0x7   :  { %p145_p2 = pnand %p143_p1, %p140_p0 }
   0x9   :  { %148 = shalt.err (!%p145_p2)
}
   0xa   :  { %s149_s20 = scalar_lea.vmem %s17_s10, 256  ;;  %p154_p4 = scmp.lt.s32.totalorder %s17_s10, %s17_s10 }
   0xb   :  { %p150_p3 = scmp.ne.s32.totalorder %s17_s10, %s149_s20  ;;  %p155_p5 = scmp.lt.s32.totalorder %s149_s20, %s149_s20 }
   0xd   :  { %p156_p6 = por %p155_p5, %p154_p4 }
   0xf   :  { %p157_p7 = pnand %p156_p6, %p150_p3 }
  0x11   :  { %160 = shalt.err (!%p157_p7)
}
  0x12   :  { %19 = dma.hbm_to_vmem [thread:$0]  %s265_s0, 256, %s17_s10, [#allocation3]  }
  0x13   :  { %s161_s25 = scalar_lea.hbm %s266_s1, 256 }
  0x14   :  { %p162_p8 = scmp.ne.s32.totalorder %s266_s1, %s161_s25  ;;  %p165_p9 = scmp.lt.u32.totalorder %s161_s25, %s266_s1 }
  0x16   :  { %p167_p10 = pnand %p165_p9, %p162_p8 }
  0x18   :  { %170 = shalt.err (!%p167_p10)
}
  0x19   :  { %s171_s30 = scalar_lea.vmem %s27_s12, 256  ;;  %p176_p12 = scmp.lt.s32.totalorder %s27_s12, %s27_s12 }
  0x1a   :  { %p172_p11 = scmp.ne.s32.totalorder %s27_s12, %s171_s30  ;;  %p177_p13 = scmp.lt.s32.totalorder %s171_s30, %s171_s30 }
  0x1c   :  { %p178_p0 = por %p177_p13, %p176_p12 }
  0x1e   :  { %p179_p1 = pnand %p178_p0, %p172_p11 }
  0x20   :  { %182 = shalt.err (!%p179_p1)
}
  0x21   :  { %29 = dma.hbm_to_vmem [thread:$0]  %s266_s1, 256, %s27_s12, [#allocation6]  }
  0x22   :  { %205 = dma.done.wait [#allocation3], 256  }
  0x23   :  { %206 = vsyncadd [#allocation3], 4294967040 }
  0x24   :  { %207 = dma.done.wait [#allocation6], 256  }
  0x25   :  { %208 = vsyncadd [#allocation6], 4294967040  ;;  %v36_v0 = vld [vmem:[#allocation2] sm:$0xff]  ;;  %v37_v1 = vld [vmem:[#allocation2 + $0x8] sm:$0xff]  ;;  %s213_s1 = smov [#allocation7]  }
  0x26   :  { %v40_v2 = vsub.f32 0.0, %v36_v0  ;;  %v41_v3 = vsub.f32 0.0, %v37_v1  ;;  %v38_v27 = vld [vmem:[#allocation5] sm:$0xff]  ;;  %v39_v30 = vld [vmem:[#allocation5 + $0x8] sm:$0xff]  ;;  %s114_s4 = sshll.u32 %s213_s1, 4  ;;  %s115_s4 = int_to_ptr.vmem [resolvable:$true] %s114_s4 }
  0x27   :  { %vm86_vm2 = vcmp.eq.f32.partialorder %v38_v27, 1.0  ;;  %vm87_vm3 = vcmp.eq.f32.partialorder %v39_v30, 1.0  ;;  %v76_v36 = vmul.f32 19.0, %v38_v27  ;;  %v77_v39 = vmul.f32 19.0, %v39_v30  ;;  %s183_s5 = scalar_lea.vmem %s115_s4, 256  ;;  %p188_p3 = scmp.lt.s32.totalorder %s115_s4, %s115_s4 }
  0x28   :  { %v44_v4 = vmin.f32 %v36_v0, %v40_v2  ;;  %v45_v5 = vmin.f32 %v37_v1, %v41_v3  ;;  %v42_v20 = vmax.f32 %v40_v2, 0.0  ;;  %v43_v24 = vmax.f32 %v41_v3, 0.0  ;;  %p184_p2 = scmp.ne.s32.totalorder %s115_s4, %s183_s5  ;;  %p189_p4 = scmp.lt.s32.totalorder %s183_s5, %s183_s5 }
  0x29   :  { %v72_v42 = vsub.f32 1.0, %v38_v27  ;;  %v78_v43 = vadd.f32 1.0, %v76_v36  ;;  %v73_v44 = vsub.f32 1.0, %v39_v30  ;;  %v79_v45 = vadd.f32 1.0, %v77_v39 }
  0x2a   :  { %v46_v6 = vmul.f32 1.442695, %v44_v4  ;;  %v48_v7 = vmul.f32 1.442695, %v45_v5  ;;  %vm98_vm4 = vcmp.ne.f32.partialorder %v38_v27, -1.0  ;;  %vm99_vm5 = vcmp.ne.f32.partialorder %v39_v30, -1.0  ;;  %p190_p5 = por %p189_p4, %p188_p3 }
  0x2b   :  { %v74_v46 = vmul.f32 %v72_v42, %v36_v0  ;;  %v75_v48 = vmul.f32 %v73_v44, %v37_v1 }
  0x2c   :  { %127 = vpow2.f32 %v46_v6  ;;  %p191_p6 = pnand %p190_p5, %p184_p2 }
  0x2d   :  { %129 = vpow2.f32 %v48_v7 }
  0x36   :  { %v128_v8 = vpop.eup %127 }
  0x37   :  { %v130_v9 = vpop.eup %129  ;;  %v50_v10 = vadd.f32 1.0, %v128_v8  ;;  %v53_v12 = vmul.f32 -0.5, %v128_v8  ;;  %v56_v15 = vand.u32 2147483647, %v128_v8 }
  0x38   :  { %v59_v11 = vadd.f32 1.0, %v130_v9  ;;  %v62_v13 = vmul.f32 -0.5, %v130_v9  ;;  %v65_v17 = vand.u32 2147483647, %v130_v9 }
  0x39   :  { %131 = vlog2.f32 %v50_v10  ;;  %v54_v14 = vadd.f32 1.0, %v53_v12  ;;  %vm57_vm0 = vcmp.lt.f32.partialorder %v56_v15, 0.0004427343 }
  0x3a   :  { %133 = vlog2.f32 %v59_v11  ;;  %v63_v16 = vadd.f32 1.0, %v62_v13  ;;  %vm66_vm1 = vcmp.lt.f32.partialorder %v65_v17, 0.0004427343 }
  0x3b   :  { %v55_v18 = vmul.f32 %v128_v8, %v54_v14 }
  0x3c   :  { %v64_v21 = vmul.f32 %v130_v9, %v63_v16 }
  0x43   :  { %v132_v19 = vpop.eup %131 }
  0x44   :  { %v134_v22 = vpop.eup %133  ;;  %v52_v23 = vmul.f32 0.6931472, %v132_v19 }
  0x45   :  { %v61_v25 = vmul.f32 0.6931472, %v134_v22 }
  0x46   :  { %v58_v26 = vsel %vm57_vm0, %v55_v18, %v52_v23 }
  0x47   :  { %v68_v28 = vadd.f32 %v58_v26, %v42_v20  ;;  %v67_v29 = vsel %vm66_vm1, %v64_v21, %v61_v25 }
  0x48   :  { %v69_v31 = vadd.f32 %v67_v29, %v43_v24 }
  0x49   :  { %v70_v32 = vsub.f32 0.0, %v68_v28 }
  0x4a   :  { %v71_v33 = vsub.f32 0.0, %v69_v31 }
  0x4b   :  { %v84_v34 = vsub.f32 %v70_v32, %v36_v0  ;;  %v80_v47 = vmul.f32 %v78_v43, %v70_v32 }
  0x4c   :  { %v85_v35 = vsub.f32 %v71_v33, %v37_v1  ;;  %v81_v49 = vmul.f32 %v79_v45, %v71_v33 }
  0x4d   :  { %v88_v37 = vsel %vm86_vm2, %v84_v34, %v70_v32  ;;  %v82_v50 = vsub.f32 %v74_v46, %v80_v47 }
  0x4e   :  { %v90_v38 = vmul.f32 1.442695, %v88_v37  ;;  %v89_v40 = vsel %vm87_vm3, %v85_v35, %v71_v33  ;;  %v83_v52 = vsub.f32 %v75_v48, %v81_v49 }
  0x4f   :  { %v92_v41 = vmul.f32 1.442695, %v89_v40 }
  0x50   :  { %135 = vpow2.f32 %v90_v38 }
  0x51   :  { %137 = vpow2.f32 %v92_v41 }
  0x5a   :  { %v136_v51 = vpop.eup %135 }
  0x5b   :  { %v138_v53 = vpop.eup %137  ;;  %v94_v54 = vmul.f32 %v136_v51, %v136_v51 }
  0x5c   :  { %v95_v55 = vmul.f32 %v138_v53, %v138_v53 }
  0x5d   :  { %v96_v56 = vmul.f32 %v94_v54, %v82_v50 }
  0x5e   :  { %v97_v57 = vmul.f32 %v95_v55, %v83_v52 }
  0x5f   :  { %vm100_vm6 = vcmp.ge.f32.partialorder %v96_v56, 1e-05 }
  0x60   :  { %vm102_vm7 = vmand %vm98_vm4, %vm100_vm6  ;;  %vm101_vm8 = vcmp.ge.f32.partialorder %v97_v57, 1e-05 }
  0x61   :  { %v104_v58 = vsel %vm102_vm7, %v96_v56, 0.0  ;;  %vm103_vm9 = vmand %vm99_vm5, %vm101_vm8 }
  0x62   :  { %106 = vst [vmem:[#allocation7] sm:$0xff] %v104_v58  ;;  %v105_v59 = vsel %vm103_vm9, %v97_v57, 0.0 }
  0x63   :  { %107 = vst [vmem:[#allocation7 + $0x8] sm:$0xff] %v105_v59 }
  0x64   :  { %194 = shalt.err (!%p191_p6)
}
  0x65   :  { %s195_s8 = scalar_lea.hbm %s267_s2, 256 }
  0x66   :  { %p196_p7 = scmp.ne.s32.totalorder %s267_s2, %s195_s8  ;;  %p199_p8 = scmp.lt.u32.totalorder %s195_s8, %s267_s2 }
  0x68   :  { %p201_p9 = pnand %p199_p8, %p196_p7 }
  0x6a   :  { %204 = shalt.err (!%p201_p9)
}
  0x6b   :  { %117 = dma.vmem_to_hbm [thread:$0]  %s115_s4, 256, %s267_s2, [#allocation4]  }
  0x6c   :  { %209 = dma.done.wait [#allocation4], 256  }
  0x6d   :  { %210 = vsyncadd [#allocation4], 4294967040 }
  0x6e   :  { %121 = vsyncpa [#allocation3], 1 }
  0x6f   :  { %122 = vsyncpa [#allocation6], 1 }
  0x70   :  { %123 = vsyncpa [#allocation4], 1 }

</bundles_post_ra>
